<compile_context>
chip_gen: v7x
topology: tpu7x:2x2x1
jax: 0.10.0
libtpu: 0.0.40
codegen_flags: <defaults>
</compile_context>

<pallas_src>
import functools

import jax
import jax.numpy as jnp
from jax.experimental import pallas as pl
from jax.experimental.pallas import tpu as pltpu


def _round_up(x, m):
    return ((x + m - 1) // m) * m


# ---------------- Pallas kernels ----------------

def _linear_head_kernel(x_ref, wo_ref, bo_ref, o_ref, *, compute_dtype):
    # out = x @ Wo + bo  (in-kernel f32->bf16 cast, MXU matmul, f32 accumulation)
    x = x_ref[...].astype(compute_dtype)
    acc = jnp.dot(x, wo_ref[...], preferred_element_type=jnp.float32)
    o_ref[...] = (acc + bo_ref[...]).astype(o_ref.dtype)


def _multilayer_head_kernel(x_ref, wd_ref, bd_ref, wo_ref, bo_ref, o_ref, *,
                            compute_dtype):
    # TODO(synk): training-mode Dropout(0.1) omitted; eval-mode dropout is identity.
    x = x_ref[...].astype(compute_dtype)
    h = jnp.dot(x, wd_ref[...], preferred_element_type=jnp.float32)
    h = jnp.tanh(h + bd_ref[...])                       # bias add + tanh in f32
    acc = jnp.dot(h.astype(compute_dtype), wo_ref[...],  # bf16 for 2nd MXU pass
                  preferred_element_type=jnp.float32)
    o_ref[...] = (acc + bo_ref[...]).astype(o_ref.dtype)


# ---------------- Parameter preparation (cache this) ----------------

def prepare_params(params, head, compute_dtype=jnp.bfloat16):
    """One-time weight cast + lane-padding; reuse the result across forward calls."""
    L = params["wo"].shape[1]
    Lp = _round_up(L, 128)                    # lane-dense output stores
    wo = params["wo"].astype(compute_dtype)
    bo = params["bo"].astype(jnp.float32)
    if Lp != L:
        wo = jnp.pad(wo, ((0, 0), (0, Lp - L)))
        bo = jnp.pad(bo, ((0, 0), (0, Lp - L)))
    prep = {"wo": wo, "bo": bo, "_n_labels": L}
    if head == "multilayer":
        prep["wd"] = params["wd"].astype(compute_dtype)
        prep["bd"] = params["bd"].astype(jnp.float32)
    return prep


# ---------------- Tiling / VMEM heuristics ----------------

def _pick_tm(B, tm):
    """Batch tile: multiple of 16, <= tm, >=2 grid steps when B allows, never > B."""
    TM = min(tm, _round_up(B, 16))
    if B >= 32:
        # Keep at least 2 grid steps so ("parallel",) can use both v7x TensorCores.
        TM = min(TM, _round_up(pl.cdiv(B, 2), 16))
    # Full-dim blocks are always legal, so never exceed the actual batch size.
    return min(TM, B)


def _vmem_limit_bytes(TM, H, Lp, head):
    est = 2 * TM * H * 4            # double-buffered f32 feature tiles
    est += 2 * TM * Lp * 4          # double-buffered f32 output tiles
    est += H * Lp * 2 + Lp * 4      # resident wo (bf16) + bo (f32)
    if head == "multilayer":
        est += H * H * 2 + H * 4    # resident wd (bf16) + bd (f32)
        est += TM * H * 4           # f32 hidden activation
    # Clamp to 48 MiB: safe headroom under v7x's 64 MiB physical VMEM, and far
    # below v5e/v6e's 128 MiB.
    return int(min(max(32 * 1024 * 1024, 2 * est), 48 * 1024 * 1024))


# ---------------- Wrapper ----------------

def classifier_forward(features, params, head, return_features=False,
                       tm=512, compute_dtype=jnp.bfloat16):
    """Pallas implementation of ModelClassifier.forward.

    features: [B, H] float32 (cast to bf16 inside the kernel)
    params:   raw params from init_params(), or (preferably) prepare_params() output.
    """
    B, H = features.shape
    if "_n_labels" not in params:            # accept raw params; prefer prepare_params()
        params = prepare_params(params, head, compute_dtype)
    L = params["_n_labels"]
    Lp = params["wo"].shape[1]
    out_dtype = features.dtype

    TM = _pick_tm(B, tm)
    grid = (pl.cdiv(B, TM),)                 # partial last block handled by Pallas

    x_spec = pl.BlockSpec((TM, H), lambda i: (i, 0))
    out_spec = pl.BlockSpec((TM, Lp), lambda i: (i, 0))
    # Constant block index -> weights/biases stay resident in VMEM across the grid.
    const2 = lambda i: (0, 0)

    cparams = pltpu.CompilerParams(
        dimension_semantics=("parallel",),   # shard batch grid across TCs (v7x)
        vmem_limit_bytes=_vmem_limit_bytes(TM, H, Lp, head),
    )

    feat_bytes = B * H * jnp.dtype(features.dtype).itemsize
    outp_bytes = B * Lp * jnp.dtype(out_dtype).itemsize

    if head == "linear":
        kernel = functools.partial(_linear_head_kernel, compute_dtype=compute_dtype)
        flops = 2 * B * H * Lp
        transcendentals = 0
        bytes_accessed = feat_bytes + H * Lp * 2 + Lp * 4 + outp_bytes
        out = pl.pallas_call(
            kernel,
            out_shape=jax.ShapeDtypeStruct((B, Lp), out_dtype),
            grid_spec=pltpu.PrefetchScalarGridSpec(
                num_scalar_prefetch=0,
                grid=grid,
                in_specs=[x_spec,
                          pl.BlockSpec((H, Lp), const2),
                          pl.BlockSpec((1, Lp), const2)],
                out_specs=out_spec,
            ),
            compiler_params=cparams,
            cost_estimate=pl.CostEstimate(flops=flops,
                                          transcendentals=transcendentals,
                                          bytes_accessed=bytes_accessed),
        )(features, params["wo"], params["bo"])
    elif head == "multilayer":
        # NOTE: wd is kept fully resident (fine for moderate H).
        # TODO(synk): for H >= ~4096 on v7x, add a K-reduction grid axis over H
        # with a (TM, H) f32 accumulator instead of a resident (H, H) wd block.
        kernel = functools.partial(_multilayer_head_kernel,
                                   compute_dtype=compute_dtype)
        flops = 2 * B * H * H + 2 * B * H * Lp
        transcendentals = B * H
        bytes_accessed = (feat_bytes + H * H * 2 + H * 4
                          + H * Lp * 2 + Lp * 4 + outp_bytes)
        out = pl.pallas_call(
            kernel,
            out_shape=jax.ShapeDtypeStruct((B, Lp), out_dtype),
            grid_spec=pltpu.PrefetchScalarGridSpec(
                num_scalar_prefetch=0,
                grid=grid,
                in_specs=[x_spec,
                          pl.BlockSpec((H, H), const2),
                          pl.BlockSpec((1, H), const2),
                          pl.BlockSpec((H, Lp), const2),
                          pl.BlockSpec((1, Lp), const2)],
                out_specs=out_spec,
            ),
            compiler_params=cparams,
            cost_estimate=pl.CostEstimate(flops=flops,
                                          transcendentals=transcendentals,
                                          bytes_accessed=bytes_accessed),
        )(features, params["wd"], params["bd"], params["wo"], params["bo"])
    else:
        raise ValueError(f"unknown head: {head}")

    out = out[:, :L]   # drop label-lane padding (no batch padding to drop)

    if return_features:
        return out, features
    return out


def init_params(key, hidden_dim, n_labels, head):
    """Deterministic init mimicking nn.Linear default (uniform +/- 1/sqrt(fan_in))."""
    params = {}
    k1, k2, k3, k4 = jax.random.split(key, 4)
    bound_o = 1.0 / (hidden_dim ** 0.5)
    # stored as [in, out] (transposed vs. PyTorch)
    params["wo"] = jax.random.uniform(k1, (hidden_dim, n_labels),
                                      minval=-bound_o, maxval=bound_o,
                                      dtype=jnp.float32)
    params["bo"] = jax.random.uniform(k2, (1, n_labels),
                                      minval=-bound_o, maxval=bound_o,
                                      dtype=jnp.float32)
    if head == "multilayer":
        bound_d = 1.0 / (hidden_dim ** 0.5)
        params["wd"] = jax.random.uniform(k3, (hidden_dim, hidden_dim),
                                          minval=-bound_d, maxval=bound_d,
                                          dtype=jnp.float32)
        params["bd"] = jax.random.uniform(k4, (1, hidden_dim),
                                          minval=-bound_d, maxval=bound_d,
                                          dtype=jnp.float32)
    return params


# ---------------- Pure-JAX references for sanity checks ----------------

def _reference_f32(features, params, head):
    if head == "linear":
        return features @ params["wo"] + params["bo"]
    h = jnp.tanh(features @ params["wd"] + params["bd"])
    return h @ params["wo"] + params["bo"]


def _reference_cast(features, params, head, compute_dtype=jnp.bfloat16):
    # Same mixed-precision recipe as the kernel: bf16 matmul inputs, f32 accumulate.
    x = features.astype(compute_dtype)
    wo = params["wo"].astype(compute_dtype)
    if head == "linear":
        return jnp.dot(x, wo, preferred_element_type=jnp.float32) + params["bo"]
    wd = params["wd"].astype(compute_dtype)
    h = jnp.tanh(jnp.dot(x, wd, preferred_element_type=jnp.float32) + params["bd"])
    return (jnp.dot(h.astype(compute_dtype), wo, preferred_element_type=jnp.float32)
            + params["bo"])


if __name__ == "__main__":
    H, L = 32, 4
    key = jax.random.PRNGKey(0)
    k_feat, k_param = jax.random.split(key)

    ok = True
    for head in ("linear", "multilayer"):
        params = init_params(k_param, H, L, head)
        prep = prepare_params(params, head)   # one-time weight cast + lane-pad

        # B=8: single full-batch block; B=40: 2 grid steps with a partial last block.
        for B in (8, 40):
            features = jax.random.normal(k_feat, (B, H), dtype=jnp.float32)

            out = jax.block_until_ready(classifier_forward(features, prep, head))
            if out.shape != (B, L):
                ok = False

            ref_c = _reference_cast(features, params, head)
            ref_f = _reference_f32(features, params, head)
            if not jnp.allclose(out, ref_c, atol=1e-2, rtol=1e-2):
                ok = False
            if not jnp.allclose(out, ref_f, atol=5e-2, rtol=5e-2):
                ok = False

            # also exercise return_features path
            out2, feats = classifier_forward(features, prep, head,
                                             return_features=True)
            jax.block_until_ready(out2)
            if not jnp.allclose(feats, features):
                ok = False
            if not jnp.allclose(out2, out):
                ok = False

    if ok:
        print("KERNEL_OK")
    else:
        print("KERNEL_MISMATCH")
</pallas_src>

<mosaic_0001>
module attributes {stable_mosaic.version = 11 : i64} {
  func.func @_linear_head_kernel(%arg0: i32, %arg1: memref<8x32xf32, #tpu.memory_space<vmem>>, %arg2: memref<32x128xbf16, #tpu.memory_space<vmem>>, %arg3: memref<1x128xf32, #tpu.memory_space<vmem>>, %arg4: memref<8x128xf32, #tpu.memory_space<vmem>>) attributes {dimension_semantics = [#tpu.dimension_semantics<parallel>], iteration_bounds = array<i64: 1>, scalar_prefetch = 0 : i64, scratch_operands = 0 : i64, tpu.core_type = #tpu.core_type<tc>, window_params = [{transform_indices = @transform_0, window_bounds = array<i64: 8, 32>}, {pipeline_mode = #tpu.pipeline_mode<synchronous>, transform_indices = @transform_1, window_bounds = array<i64: 32, 128>}, {pipeline_mode = #tpu.pipeline_mode<synchronous>, transform_indices = @transform_2, window_bounds = array<i64: 1, 128>}, {transform_indices = @transform_3, window_bounds = array<i64: 8, 128>}]} {
    %c0 = arith.constant 0 : index
    %c0_0 = arith.constant 0 : index
    %0 = vector.load %arg1[%c0, %c0_0] : memref<8x32xf32, #tpu.memory_space<vmem>>, vector<8x32xf32>
    %1 = arith.truncf %0 : vector<8x32xf32> to vector<8x32xbf16>
    %c0_1 = arith.constant 0 : index
    %c0_2 = arith.constant 0 : index
    %2 = vector.load %arg2[%c0_1, %c0_2] : memref<32x128xbf16, #tpu.memory_space<vmem>>, vector<32x128xbf16>
    %cst = arith.constant dense<0.000000e+00> : vector<8x128xf32>
    %3 = tpu.matmul %1, %2, %cst {dimension_numbers = #tpu.dot_dimension_numbers<[1], [0], [0], [1], [0, 0, 1, 1], [], []>} : vector<8x32xbf16>, vector<32x128xbf16>, vector<8x128xf32> -> vector<8x128xf32>
    %c0_3 = arith.constant 0 : index
    %c0_4 = arith.constant 0 : index
    %4 = vector.load %arg3[%c0_3, %c0_4] : memref<1x128xf32, #tpu.memory_space<vmem>>, vector<1x128xf32>
    %5 = vector.broadcast %4 : vector<1x128xf32> to vector<8x128xf32>
    %6 = arith.addf %3, %5 : vector<8x128xf32>
    %c0_5 = arith.constant 0 : index
    %c0_6 = arith.constant 0 : index
    %7 = vector.load %arg4[%c0_5, %c0_6] : memref<8x128xf32, #tpu.memory_space<vmem>>, vector<8x128xf32>
    tpu.vector_store %arg4[%c0_5, %c0_6], %6 {strides = array<i32>} : memref<8x128xf32, #tpu.memory_space<vmem>>, vector<8x128xf32>,
    return
  }
  func.func @transform_0(%arg0: i32) -> (i32, i32) {
    %c0_i32 = arith.constant 0 : i32
    %c0_i32_0 = arith.constant 0 : i32
    return %arg0, %c0_i32 : i32, i32
  }
  func.func @transform_1(%arg0: i32) -> (i32, i32) {
    %c0_i32 = arith.constant 0 : i32
    %c0_i32_0 = arith.constant 0 : i32
    %c0_i32_1 = arith.constant 0 : i32
    return %c0_i32, %c0_i32_0 : i32, i32
  }
  func.func @transform_2(%arg0: i32) -> (i32, i32) {
    %c0_i32 = arith.constant 0 : i32
    %c0_i32_0 = arith.constant 0 : i32
    %c0_i32_1 = arith.constant 0 : i32
    return %c0_i32, %c0_i32_0 : i32, i32
  }
  func.func @transform_3(%arg0: i32) -> (i32, i32) {
    %c0_i32 = arith.constant 0 : i32
    %c0_i32_0 = arith.constant 0 : i32
    return %arg0, %c0_i32 : i32, i32
  }
}

</mosaic_0001>

<bundles_post_ra>
// kernel: tpu_custom_call.1
= control target key start
LH: loop header
LB: loop body
LE: loop exit
PB: predicated region body
PF: predicated region fallthrough
CT: control target
= control target key end

     0   :  { %8 = vsyncpa [#allocation3], 0  ;;  %s297_s0 = inlined_call_operand.hbm [shape: f32[8,32], index: 0, kind: input, shape index: {}]   ;;  %s298_s1 = inlined_call_operand.hbm [shape: bf16[32,128], index: 1, kind: input, shape index: {}]   ;;  %s299_s2 = inlined_call_operand.vmem [shape: f32[1,128], index: 2, kind: input, shape index: {}]   ;;  %s300_s3 = inlined_call_operand.hbm [shape: f32[8,128], index: 3, kind: output, shape index: {}]  }
   0x1   :  { %9 = vsyncpa [#allocation6], 0 }
   0x2   :  { %10 = vsyncpa [#allocation4], 0  ;;  %s224_s12 = smov [#allocation2]   ;;  %s225_s14 = smov [#allocation5]  }
   0x3   :  { %s17_s13 = sshll.u32 %s224_s12, 4  ;;  %s26_s15 = sshll.u32 %s225_s14, 4  ;;  %s18_s13 = int_to_ptr.vmem [resolvable:$true] %s17_s13  ;;  %s251_s15 = int_to_ptr.vmem [resolvable:$true] %s26_s15 }
   0x4   :  { %s152_s18 = scalar_lea.hbm %s297_s0, 128 }
   0x5   :  { %p153_p0 = scmp.ne.s32.totalorder %s297_s0, %s152_s18  ;;  %p156_p1 = scmp.lt.u32.totalorder %s152_s18, %s297_s0 }
   0x7   :  { %p158_p2 = pnand %p156_p1, %p153_p0 }
   0x9   :  { %161 = shalt.err (!%p158_p2)
}
   0xa   :  { %s162_s23 = scalar_lea.vmem %s18_s13, 128  ;;  %p167_p4 = scmp.lt.s32.totalorder %s18_s13, %s18_s13 }
   0xb   :  { %p163_p3 = scmp.ne.s32.totalorder %s18_s13, %s162_s23  ;;  %p168_p5 = scmp.lt.s32.totalorder %s162_s23, %s162_s23 }
   0xd   :  { %p169_p6 = por %p168_p5, %p167_p4 }
   0xf   :  { %p170_p7 = pnand %p169_p6, %p163_p3 }
  0x11   :  { %173 = shalt.err (!%p170_p7)
}
  0x12   :  { %20 = dma.hbm_to_vmem [thread:$0]  %s297_s0, 128, %s18_s13, [#allocation3]  }
  0x13   :  { %s174_s28 = scalar_lea.hbm %s298_s1, 256 }
  0x14   :  { %p175_p8 = scmp.ne.s32.totalorder %s298_s1, %s174_s28  ;;  %p178_p9 = scmp.lt.u32.totalorder %s174_s28, %s298_s1 }
  0x16   :  { %p180_p10 = pnand %p178_p9, %p175_p8 }
  0x18   :  { %183 = shalt.err (!%p180_p10)
}
  0x19   :  { %s184_s6 = scalar_lea.vmem %s251_s15, 256  ;;  %p189_p12 = scmp.lt.s32.totalorder %s251_s15, %s251_s15 }
  0x1a   :  { %p185_p11 = scmp.ne.s32.totalorder %s251_s15, %s184_s6  ;;  %p190_p13 = scmp.lt.s32.totalorder %s184_s6, %s184_s6 }
  0x1c   :  { %p191_p0 = por %p190_p13, %p189_p12 }
  0x1e   :  { %p192_p1 = pnand %p191_p0, %p185_p11 }
  0x20   :  { %195 = shalt.err (!%p192_p1)
}
  0x21   :  { %s226_s0 = smov 64   ;;  %s227_s7 = smov 4  }
  0x22   :  { %32 = dma.hbm_to_vmem [thread:$0]  %s298_s1, 256, %s251_s15, [#allocation6], %s226_s0, %s226_s0, %s227_s7  }
  0x23   :  { %218 = dma.done.wait [#allocation3], 128  }
  0x24   :  { %219 = vsyncadd [#allocation3], 4294967168 }
  0x25   :  { %220 = dma.done.wait [#allocation6], 256  }
  0x26   :  { %221 = vsyncadd [#allocation6], 4294967040  ;;  %v228_v0 = vmov 0.0   ;;  %vm229_vm0 = vmmov 0   ;;  %v150_v1 = vld [vmem:[#allocation5] sm:$0xff]   ;;  %v151_v2 = vld [vmem:[#allocation5 + $0x8] sm:$0xff]  }
  0x27   :  { %135 = vmatprep.subr.bf16.mxu0 %v228_v0  ;;  %139 = vmatprep.mubr.msk.bf16.mxu0 %vm229_vm0, %v228_v0  ;;  %v42_v3 = vld [vmem:[#allocation2] sm:$0xff]  ;;  %vm67_vm1 = vcmask 261120   ;;  %s230_s1 = smov [#allocation7]  }
  0x28   :  { %136 = vmatpush3.bf16.msra.mxu0 %v150_v1  ;;  %v43_v4 = vpack.c.bf16 %v42_v3, %v42_v3  ;;  %v128_v5 = vld [vmem:[%s299_s2] ss:$0 sm:$0xff]  ;;  %s118_s12 = sshll.u32 %s230_s1, 4  ;;  %s119_s12 = int_to_ptr.vmem [resolvable:$true] %s118_s12 }
  0x29   :  { %137 = vmatprep.subr.bf16.mxu0 %v228_v0  ;;  %s196_s13 = scalar_lea.vmem %s119_s12, 128  ;;  %p201_p3 = scmp.lt.s32.totalorder %s119_s12, %s119_s12 }
  0x2a   :  { %p197_p2 = scmp.ne.s32.totalorder %s119_s12, %s196_s13  ;;  %p202_p4 = scmp.lt.s32.totalorder %s196_s13, %s196_s13 }
  0x2c   :  { %138 = vmatpush3.bf16.msra.mxu0 %v151_v2  ;;  %p203_p5 = por %p202_p4, %p201_p3 }
  0x2e   :  { %p204_p6 = pnand %p203_p5, %p197_p2 }
  0x2f   :  { %140 = vmatmul.mubr.msk.bf16.vlgmr.msra.gmra.mrb[0].mxu0 %vm67_vm1, %v43_v4 }
 0x102   :  { %v105_v6 = vpop.f32.mrb[0].mxu0 }
 0x103   :  { %v106_v7 = vadd.f32 %v128_v5, %v105_v6  ;;  %v141_v8 = vpop.f32.mrb[1].mxu0 }
 0x104   :  { %v108_v9 = vpop.f32.mrb[2].mxu0 }
 0x105   :  { %111 = vst [vmem:[#allocation7] sm:$0xff] %v106_v7  ;;  %v142_v10 = vpop.f32.mrb[3].mxu0 }
 0x106   :  { %207 = shalt.err (!%p204_p6)
}
 0x107   :  { %s208_s2 = scalar_lea.hbm %s300_s3, 128 }
 0x108   :  { %p209_p7 = scmp.ne.s32.totalorder %s300_s3, %s208_s2  ;;  %p212_p8 = scmp.lt.u32.totalorder %s208_s2, %s300_s3 }
 0x10a   :  { %p214_p9 = pnand %p212_p8, %p209_p7 }
 0x10c   :  { %217 = shalt.err (!%p214_p9)
}
 0x10d   :  { %121 = dma.vmem_to_hbm [thread:$0]  %s119_s12, 128, %s300_s3, [#allocation4]  }
 0x10e   :  { %222 = dma.done.wait [#allocation4], 128  }
 0x10f   :  { %223 = vsyncadd [#allocation4], 4294967168 }
 0x110   :  { %125 = vsyncpa [#allocation3], 1 }
 0x111   :  { %126 = vsyncpa [#allocation6], 1 }
 0x112   :  { %127 = vsyncpa [#allocation4], 1 }

</bundles_post_ra>
